<compile_context>
chip_gen: v7x
topology: tpu7x:2x2x1
jax: 0.10.0
libtpu: 0.0.40
codegen_flags: <defaults>
</compile_context>

<pallas_src>
import functools

import jax
import jax.numpy as jnp
from jax.experimental import pallas as pl
from jax.experimental.pallas import tpu as pltpu


def _lstm_encoder_kernel(xdt_ref, w_ref, out_ref, *, T, BP, H, L, off):
    """Whole forward in one invocation (no grid).

    xdt_ref : [T*BP, D+1] bf16  time-major [x | dt], batch padded to BP rows
    w_ref   : [R, 4H]     f32   packed parameter slab (see pack_params)
    out_ref : [BP, 2L]    f32   z0 = (mean | log_std); rows >= B are padding
    """
    d1 = xdt_ref.shape[1]                                   # D + 1

    # LSTM parameters (bf16 MXU operands; cast once, off the serial chain).
    wih = w_ref[off["wih"]:off["wih"] + d1, :].astype(jnp.bfloat16)  # [D+1,4H]
    bg = w_ref[off["bg"]:off["bg"] + 1, :]                           # [1, 4H]
    wh = w_ref[off["wh"]:off["wh"] + H, :].astype(jnp.bfloat16)      # [H, 4H]

    # Hoisted input projection for all T steps (dt already folded into xdt):
    #   pre[j] = [x_j | dt_j] @ W_ih^T + (b_ih + b_hh)
    xw = jnp.dot(xdt_ref[...], wih, preferred_element_type=jnp.float32) + bg

    h = jnp.zeros((BP, H), jnp.float32)
    c = jnp.zeros((BP, H), jnp.float32)

    # LSTM over the time-reversed sequence xt.flip((0,)): process original
    # indices j = T-1 .. 0; the final h is h_n[0].  Fully unrolled static loop.
    for s in range(T):
        j = T - 1 - s
        gates = xw[j * BP:(j + 1) * BP, :] + jnp.dot(
            h.astype(jnp.bfloat16), wh, preferred_element_type=jnp.float32)
        # One sigmoid + one tanh over the full 128-lane gates tile, then slice.
        sig = pl.reciprocal(1.0 + jnp.exp(-gates), approx=True)
        th = jnp.tanh(gates)
        # PyTorch gate order: input, forget, cell(g), output
        i_g = sig[:, 0 * H:1 * H]
        f_g = sig[:, 1 * H:2 * H]
        g_g = th[:, 2 * H:3 * H]
        o_g = sig[:, 3 * H:4 * H]
        c = f_g * c + i_g * g_g
        h = o_g * jnp.tanh(c)

    # MLP head: Linear -> tanh -> Linear -> tanh -> Linear   (runs once, f32)
    w1 = w_ref[off["w1"]:off["w1"] + H, 0:H]
    b1 = w_ref[off["b1"]:off["b1"] + 1, 0:H]
    w2 = w_ref[off["w2"]:off["w2"] + H, 0:H]
    b2 = w_ref[off["b2"]:off["b2"] + 1, 0:H]
    w3 = w_ref[off["w3"]:off["w3"] + H, 0:2 * L]
    b3 = w_ref[off["b3"]:off["b3"] + 1, 0:2 * L]
    h1 = jnp.tanh(jnp.dot(h, w1, preferred_element_type=jnp.float32) + b1)
    h2 = jnp.tanh(jnp.dot(h1, w2, preferred_element_type=jnp.float32) + b2)
    out_ref[...] = jnp.dot(h2, w3, preferred_element_type=jnp.float32) + b3


def pack_params(params, input_dim, hidden_dim, latent_dim):
    """Pre-transpose and pack all parameters into one [R, 4H] f32 slab.

    Called ONCE (outside the per-forward path). Returns (slab, offsets)."""
    w_ih, w_hh, b_ih, b_hh, w1, b1, w2, b2, w3, b3 = params
    D, H, L = input_dim, hidden_dim, latent_dim
    lw = 4 * H
    assert lw % 128 == 0, "kernel assumes lane-dense gates: 4*hidden_dim % 128 == 0"
    assert 2 * L <= lw and H <= lw

    blocks, offsets = [], {}
    cur = 0

    def add(name, a):
        nonlocal cur
        a = jnp.asarray(a, jnp.float32)
        if a.ndim == 1:
            a = a[None, :]
        if a.shape[1] < lw:                       # pad lanes to 4H width
            a = jnp.pad(a, ((0, 0), (0, lw - a.shape[1])))
        pad = (-cur) % 8                          # keep blocks sublane-aligned
        if pad:
            blocks.append(jnp.zeros((pad, lw), jnp.float32))
            cur += pad
        offsets[name] = cur
        blocks.append(a)
        cur += a.shape[0]

    add("wih", w_ih.T)           # [D+1, 4H]  full W_ih (x and dt columns)
    add("bg", b_ih + b_hh)       # [1, 4H]    combined LSTM bias
    add("wh", w_hh.T)            # [H, 4H]
    add("w1", w1.T)              # [H, H]   (lanes 0:H valid)
    add("b1", b1)
    add("w2", w2.T)
    add("b2", b2)
    add("w3", w3.T)              # [H, 2L]  (lanes 0:2L valid)
    add("b3", b3)

    tail = (-cur) % 8
    if tail:
        blocks.append(jnp.zeros((tail, lw), jnp.float32))
        cur += tail
    slab = jnp.concatenate(blocks, axis=0)
    return slab, offsets


def lstm_encoder_forward(x, t, packed, hidden_dim, latent_dim):
    """x: [T, B, D], t: [T, B, 1]; packed = pack_params(...). -> (mean, log_std)."""
    slab, off = packed
    T, B, D = x.shape
    H, L = hidden_dim, latent_dim
    BP = ((max(B, 8) + 7) // 8) * 8               # pad batch to the 8-sublane tile

    # dt[0] = 0, dt[j] = t[j-1] - t[j]  (matches t[1:] = t[:-1]-t[1:]; t[0]=0)
    dt = jnp.concatenate([jnp.zeros_like(t[:1]), t[:-1] - t[1:]], axis=0)
    xdt = jnp.concatenate([x, dt], axis=-1)                  # [T, B, D+1]
    xdt = jnp.pad(xdt, ((0, 0), (0, BP - B), (0, 0)))        # [T, BP, D+1]
    xdt_flat = xdt.reshape(T * BP, D + 1).astype(jnp.bfloat16)

    kernel = functools.partial(_lstm_encoder_kernel,
                               T=T, BP=BP, H=H, L=L, off=off)
    z0p = pl.pallas_call(
        kernel,
        out_shape=jax.ShapeDtypeStruct((BP, 2 * L), jnp.float32),
        in_specs=[pl.BlockSpec(memory_space=pltpu.MemorySpace.VMEM)] * 2,
        out_specs=pl.BlockSpec(memory_space=pltpu.MemorySpace.VMEM),
    )(xdt_flat, slab)

    z0 = z0p[:B]
    return z0[:, :L], z0[:, L:]


# ----------------------------- pure-JAX reference ---------------------------
def lstm_encoder_ref(x, t, params, latent_dim):
    (w_ih, w_hh, b_ih, b_hh, w1, b1, w2, b2, w3, b3) = params
    T, B, D = x.shape
    H = w_hh.shape[1]
    dt = jnp.concatenate([jnp.zeros_like(t[:1]), t[:-1] - t[1:]], axis=0)
    xt = jnp.concatenate([x, dt], axis=-1)[::-1]     # flip time axis
    h = jnp.zeros((B, H), jnp.float32)
    c = jnp.zeros((B, H), jnp.float32)
    for s in range(T):
        z = xt[s] @ w_ih.T + b_ih + h @ w_hh.T + b_hh
        i = jax.nn.sigmoid(z[:, :H])
        f = jax.nn.sigmoid(z[:, H:2 * H])
        g = jnp.tanh(z[:, 2 * H:3 * H])
        o = jax.nn.sigmoid(z[:, 3 * H:])
        c = f * c + i * g
        h = o * jnp.tanh(c)
    h1 = jnp.tanh(h @ w1.T + b1)
    h2 = jnp.tanh(h1 @ w2.T + b2)
    z0 = h2 @ w3.T + b3
    return z0[:, :latent_dim], z0[:, latent_dim:]


if __name__ == "__main__":
    T, B, D, H, L = 8, 2, 4, 32, 8      # seq, batch, input_dim, hidden, latent

    key = jax.random.PRNGKey(0)
    keys = jax.random.split(key, 12)
    s = 0.1
    w_ih = jax.random.normal(keys[0], (4 * H, D + 1), jnp.float32) * s
    w_hh = jax.random.normal(keys[1], (4 * H, H), jnp.float32) * s
    b_ih = jax.random.normal(keys[2], (4 * H,), jnp.float32) * s
    b_hh = jax.random.normal(keys[3], (4 * H,), jnp.float32) * s
    w1 = jax.random.normal(keys[4], (H, H), jnp.float32) * s
    b1 = jax.random.normal(keys[5], (H,), jnp.float32) * s
    w2 = jax.random.normal(keys[6], (H, H), jnp.float32) * s
    b2 = jax.random.normal(keys[7], (H,), jnp.float32) * s
    w3 = jax.random.normal(keys[8], (2 * L, H), jnp.float32) * s
    b3 = jax.random.normal(keys[9], (2 * L,), jnp.float32) * s
    params = (w_ih, w_hh, b_ih, b_hh, w1, b1, w2, b2, w3, b3)

    # Pack/transpose the parameters once, outside the per-call path.
    packed = pack_params(params, D, H, L)

    x = jax.random.normal(keys[10], (T, B, D), jnp.float32)
    t = jnp.cumsum(
        jax.random.uniform(keys[11], (T, B, 1), jnp.float32, 0.05, 0.2), axis=0)

    mean, log_std = lstm_encoder_forward(x, t, packed, H, L)
    mean, log_std = jax.block_until_ready((mean, log_std))

    mean_ref, log_std_ref = lstm_encoder_ref(x, t, params, L)
    assert mean.shape == (B, L) and log_std.shape == (B, L)
    # bf16 MXU operands (f32 accumulation) -> tolerance loosened vs pure f32.
    assert jnp.allclose(mean, mean_ref, rtol=2e-2, atol=2e-2), \
        float(jnp.max(jnp.abs(mean - mean_ref)))
    assert jnp.allclose(log_std, log_std_ref, rtol=2e-2, atol=2e-2), \
        float(jnp.max(jnp.abs(log_std - log_std_ref)))

    print("KERNEL_OK")
</pallas_src>

<mosaic_0001>
module attributes {stable_mosaic.version = 11 : i64} {
  func.func @_lstm_encoder_kernel(%arg0: memref<64x5xbf16, #tpu.memory_space<vmem>>, %arg1: memref<168x128xf32, #tpu.memory_space<vmem>>, %arg2: memref<8x16xf32, #tpu.memory_space<vmem>>) attributes {dimension_semantics = [], scalar_prefetch = 0 : i64, scratch_operands = 0 : i64, tpu.core_type = #tpu.core_type<tc>} {
    %c0 = arith.constant 0 : index
    %c0_0 = arith.constant 0 : index
    %0 = vector.load %arg1[%c0, %c0_0] : memref<168x128xf32, #tpu.memory_space<vmem>>, vector<5x128xf32>
    %1 = arith.truncf %0 : vector<5x128xf32> to vector<5x128xbf16>
    %c8 = arith.constant 8 : index
    %c0_1 = arith.constant 0 : index
    %2 = vector.load %arg1[%c8, %c0_1] : memref<168x128xf32, #tpu.memory_space<vmem>>, vector<1x128xf32>
    %c16 = arith.constant 16 : index
    %c0_2 = arith.constant 0 : index
    %3 = vector.load %arg1[%c16, %c0_2] : memref<168x128xf32, #tpu.memory_space<vmem>>, vector<32x128xf32>
    %4 = arith.truncf %3 : vector<32x128xf32> to vector<32x128xbf16>
    %c0_3 = arith.constant 0 : index
    %c0_4 = arith.constant 0 : index
    %5 = vector.load %arg0[%c0_3, %c0_4] : memref<64x5xbf16, #tpu.memory_space<vmem>>, vector<64x5xbf16>
    %cst = arith.constant dense<0.000000e+00> : vector<64x128xf32>
    %6 = tpu.matmul %5, %1, %cst {dimension_numbers = #tpu.dot_dimension_numbers<[1], [0], [0], [1], [0, 0, 1, 1], [], []>} : vector<64x5xbf16>, vector<5x128xbf16>, vector<64x128xf32> -> vector<64x128xf32>
    %7 = vector.broadcast %2 : vector<1x128xf32> to vector<64x128xf32>
    %8 = arith.addf %6, %7 : vector<64x128xf32>
    %cst_5 = arith.constant 0.000000e+00 : f32
    %9 = vector.broadcast %cst_5 : f32 to vector<8x32xf32>
    %cst_6 = arith.constant 0.000000e+00 : f32
    %10 = vector.broadcast %cst_6 : f32 to vector<8x32xf32>
    %11 = vector.extract_strided_slice %8 {offsets = [56, 0], sizes = [8, 128], strides = [1, 1]} : vector<64x128xf32> to vector<8x128xf32>
    %12 = arith.truncf %9 : vector<8x32xf32> to vector<8x32xbf16>
    %cst_7 = arith.constant dense<0.000000e+00> : vector<8x128xf32>
    %13 = tpu.matmul %12, %4, %cst_7 {dimension_numbers = #tpu.dot_dimension_numbers<[1], [0], [0], [1], [0, 0, 1, 1], [], []>} : vector<8x32xbf16>, vector<32x128xbf16>, vector<8x128xf32> -> vector<8x128xf32>
    %14 = arith.addf %11, %13 : vector<8x128xf32>
    %cst_8 = arith.constant 0.000000e+00 : f32
    %15 = vector.broadcast %cst_8 : f32 to vector<8x128xf32>
    %16 = arith.subf %15, %14 : vector<8x128xf32>
    %17 = math.exp %16 : vector<8x128xf32>
    %cst_9 = arith.constant 1.000000e+00 : f32
    %18 = vector.broadcast %cst_9 : f32 to vector<8x128xf32>
    %19 = arith.addf %18, %17 : vector<8x128xf32>
    %20 = tpu.reciprocal %19 {approx = true} : vector<8x128xf32> -> vector<8x128xf32>
    %21 = math.tanh %14 : vector<8x128xf32>
    %22 = vector.extract_strided_slice %20 {offsets = [0, 0], sizes = [8, 32], strides = [1, 1]} : vector<8x128xf32> to vector<8x32xf32>
    %23 = vector.extract_strided_slice %20 {offsets = [0, 32], sizes = [8, 32], strides = [1, 1]} : vector<8x128xf32> to vector<8x32xf32>
    %24 = vector.extract_strided_slice %21 {offsets = [0, 64], sizes = [8, 32], strides = [1, 1]} : vector<8x128xf32> to vector<8x32xf32>
    %25 = vector.extract_strided_slice %20 {offsets = [0, 96], sizes = [8, 32], strides = [1, 1]} : vector<8x128xf32> to vector<8x32xf32>
    %26 = arith.mulf %23, %10 : vector<8x32xf32>
    %27 = arith.mulf %22, %24 : vector<8x32xf32>
    %28 = arith.addf %26, %27 : vector<8x32xf32>
    %29 = math.tanh %28 : vector<8x32xf32>
    %30 = arith.mulf %25, %29 : vector<8x32xf32>
    %31 = vector.extract_strided_slice %8 {offsets = [48, 0], sizes = [8, 128], strides = [1, 1]} : vector<64x128xf32> to vector<8x128xf32>
    %32 = arith.truncf %30 : vector<8x32xf32> to vector<8x32xbf16>
    %cst_10 = arith.constant dense<0.000000e+00> : vector<8x128xf32>
    %33 = tpu.matmul %32, %4, %cst_10 {dimension_numbers = #tpu.dot_dimension_numbers<[1], [0], [0], [1], [0, 0, 1, 1], [], []>} : vector<8x32xbf16>, vector<32x128xbf16>, vector<8x128xf32> -> vector<8x128xf32>
    %34 = arith.addf %31, %33 : vector<8x128xf32>
    %cst_11 = arith.constant 0.000000e+00 : f32
    %35 = vector.broadcast %cst_11 : f32 to vector<8x128xf32>
    %36 = arith.subf %35, %34 : vector<8x128xf32>
    %37 = math.exp %36 : vector<8x128xf32>
    %cst_12 = arith.constant 1.000000e+00 : f32
    %38 = vector.broadcast %cst_12 : f32 to vector<8x128xf32>
    %39 = arith.addf %38, %37 : vector<8x128xf32>
    %40 = tpu.reciprocal %39 {approx = true} : vector<8x128xf32> -> vector<8x128xf32>
    %41 = math.tanh %34 : vector<8x128xf32>
    %42 = vector.extract_strided_slice %40 {offsets = [0, 0], sizes = [8, 32], strides = [1, 1]} : vector<8x128xf32> to vector<8x32xf32>
    %43 = vector.extract_strided_slice %40 {offsets = [0, 32], sizes = [8, 32], strides = [1, 1]} : vector<8x128xf32> to vector<8x32xf32>
    %44 = vector.extract_strided_slice %41 {offsets = [0, 64], sizes = [8, 32], strides = [1, 1]} : vector<8x128xf32> to vector<8x32xf32>
    %45 = vector.extract_strided_slice %40 {offsets = [0, 96], sizes = [8, 32], strides = [1, 1]} : vector<8x128xf32> to vector<8x32xf32>
    %46 = arith.mulf %43, %28 : vector<8x32xf32>
    %47 = arith.mulf %42, %44 : vector<8x32xf32>
    %48 = arith.addf %46, %47 : vector<8x32xf32>
    %49 = math.tanh %48 : vector<8x32xf32>
    %50 = arith.mulf %45, %49 : vector<8x32xf32>
    %51 = vector.extract_strided_slice %8 {offsets = [40, 0], sizes = [8, 128], strides = [1, 1]} : vector<64x128xf32> to vector<8x128xf32>
    %52 = arith.truncf %50 : vector<8x32xf32> to vector<8x32xbf16>
    %cst_13 = arith.constant dense<0.000000e+00> : vector<8x128xf32>
    %53 = tpu.matmul %52, %4, %cst_13 {dimension_numbers = #tpu.dot_dimension_numbers<[1], [0], [0], [1], [0, 0, 1, 1], [], []>} : vector<8x32xbf16>, vector<32x128xbf16>, vector<8x128xf32> -> vector<8x128xf32>
    %54 = arith.addf %51, %53 : vector<8x128xf32>
    %cst_14 = arith.constant 0.000000e+00 : f32
    %55 = vector.broadcast %cst_14 : f32 to vector<8x128xf32>
    %56 = arith.subf %55, %54 : vector<8x128xf32>
    %57 = math.exp %56 : vector<8x128xf32>
    %cst_15 = arith.constant 1.000000e+00 : f32
    %58 = vector.broadcast %cst_15 : f32 to vector<8x128xf32>
    %59 = arith.addf %58, %57 : vector<8x128xf32>
    %60 = tpu.reciprocal %59 {approx = true} : vector<8x128xf32> -> vector<8x128xf32>
    %61 = math.tanh %54 : vector<8x128xf32>
    %62 = vector.extract_strided_slice %60 {offsets = [0, 0], sizes = [8, 32], strides = [1, 1]} : vector<8x128xf32> to vector<8x32xf32>
    %63 = vector.extract_strided_slice %60 {offsets = [0, 32], sizes = [8, 32], strides = [1, 1]} : vector<8x128xf32> to vector<8x32xf32>
    %64 = vector.extract_strided_slice %61 {offsets = [0, 64], sizes = [8, 32], strides = [1, 1]} : vector<8x128xf32> to vector<8x32xf32>
    %65 = vector.extract_strided_slice %60 {offsets = [0, 96], sizes = [8, 32], strides = [1, 1]} : vector<8x128xf32> to vector<8x32xf32>
    %66 = arith.mulf %63, %48 : vector<8x32xf32>
    %67 = arith.mulf %62, %64 : vector<8x32xf32>
    %68 = arith.addf %66, %67 : vector<8x32xf32>
    %69 = math.tanh %68 : vector<8x32xf32>
    %70 = arith.mulf %65, %69 : vector<8x32xf32>
    %71 = vector.extract_strided_slice %8 {offsets = [32, 0], sizes = [8, 128], strides = [1, 1]} : vector<64x128xf32> to vector<8x128xf32>
    %72 = arith.truncf %70 : vector<8x32xf32> to vector<8x32xbf16>
    %cst_16 = arith.constant dense<0.000000e+00> : vector<8x128xf32>
    %73 = tpu.matmul %72, %4, %cst_16 {dimension_numbers = #tpu.dot_dimension_numbers<[1], [0], [0], [1], [0, 0, 1, 1], [], []>} : vector<8x32xbf16>, vector<32x128xbf16>, vector<8x128xf32> -> vector<8x128xf32>
    %74 = arith.addf %71, %73 : vector<8x128xf32>
    %cst_17 = arith.constant 0.000000e+00 : f32
    %75 = vector.broadcast %cst_17 : f32 to vector<8x128xf32>
    %76 = arith.subf %75, %74 : vector<8x128xf32>
    %77 = math.exp %76 : vector<8x128xf32>
    %cst_18 = arith.constant 1.000000e+00 : f32
    %78 = vector.broadcast %cst_18 : f32 to vector<8x128xf32>
    %79 = arith.addf %78, %77 : vector<8x128xf32>
    %80 = tpu.reciprocal %79 {approx = true} : vector<8x128xf32> -> vector<8x128xf32>
    %81 = math.tanh %74 : vector<8x128xf32>
    %82 = vector.extract_strided_slice %80 {offsets = [0, 0], sizes = [8, 32], strides = [1, 1]} : vector<8x128xf32> to vector<8x32xf32>
    %83 = vector.extract_strided_slice %80 {offsets = [0, 32], sizes = [8, 32], strides = [1, 1]} : vector<8x128xf32> to vector<8x32xf32>
    %84 = vector.extract_strided_slice %81 {offsets = [0, 64], sizes = [8, 32], strides = [1, 1]} : vector<8x128xf32> to vector<8x32xf32>
    %85 = vector.extract_strided_slice %80 {offsets = [0, 96], sizes = [8, 32], strides = [1, 1]} : vector<8x128xf32> to vector<8x32xf32>
    %86 = arith.mulf %83, %68 : vector<8x32xf32>
    %87 = arith.mulf %82, %84 : vector<8x32xf32>
    %88 = arith.addf %86, %87 : vector<8x32xf32>
    %89 = math.tanh %88 : vector<8x32xf32>
    %90 = arith.mulf %85, %89 : vector<8x32xf32>
    %91 = vector.extract_strided_slice %8 {offsets = [24, 0], sizes = [8, 128], strides = [1, 1]} : vector<64x128xf32> to vector<8x128xf32>
    %92 = arith.truncf %90 : vector<8x32xf32> to vector<8x32xbf16>
    %cst_19 = arith.constant dense<0.000000e+00> : vector<8x128xf32>
    %93 = tpu.matmul %92, %4, %cst_19 {dimension_numbers = #tpu.dot_dimension_numbers<[1], [0], [0], [1], [0, 0, 1, 1], [], []>} : vector<8x32xbf16>, vector<32x128xbf16>, vector<8x128xf32> -> vector<8x128xf32>
    %94 = arith.addf %91, %93 : vector<8x128xf32>
    %cst_20 = arith.constant 0.000000e+00 : f32
    %95 = vector.broadcast %cst_20 : f32 to vector<8x128xf32>
    %96 = arith.subf %95, %94 : vector<8x128xf32>
    %97 = math.exp %96 : vector<8x128xf32>
    %cst_21 = arith.constant 1.000000e+00 : f32
    %98 = vector.broadcast %cst_21 : f32 to vector<8x128xf32>
    %99 = arith.addf %98, %97 : vector<8x128xf32>
    %100 = tpu.reciprocal %99 {approx = true} : vector<8x128xf32> -> vector<8x128xf32>
    %101 = math.tanh %94 : vector<8x128xf32>
    %102 = vector.extract_strided_slice %100 {offsets = [0, 0], sizes = [8, 32], strides = [1, 1]} : vector<8x128xf32> to vector<8x32xf32>
    %103 = vector.extract_strided_slice %100 {offsets = [0, 32], sizes = [8, 32], strides = [1, 1]} : vector<8x128xf32> to vector<8x32xf32>
    %104 = vector.extract_strided_slice %101 {offsets = [0, 64], sizes = [8, 32], strides = [1, 1]} : vector<8x128xf32> to vector<8x32xf32>
    %105 = vector.extract_strided_slice %100 {offsets = [0, 96], sizes = [8, 32], strides = [1, 1]} : vector<8x128xf32> to vector<8x32xf32>
    %106 = arith.mulf %103, %88 : vector<8x32xf32>
    %107 = arith.mulf %102, %104 : vector<8x32xf32>
    %108 = arith.addf %106, %107 : vector<8x32xf32>
    %109 = math.tanh %108 : vector<8x32xf32>
    %110 = arith.mulf %105, %109 : vector<8x32xf32>
    %111 = vector.extract_strided_slice %8 {offsets = [16, 0], sizes = [8, 128], strides = [1, 1]} : vector<64x128xf32> to vector<8x128xf32>
    %112 = arith.truncf %110 : vector<8x32xf32> to vector<8x32xbf16>
    %cst_22 = arith.constant dense<0.000000e+00> : vector<8x128xf32>
    %113 = tpu.matmul %112, %4, %cst_22 {dimension_numbers = #tpu.dot_dimension_numbers<[1], [0], [0], [1], [0, 0, 1, 1], [], []>} : vector<8x32xbf16>, vector<32x128xbf16>, vector<8x128xf32> -> vector<8x128xf32>
    %114 = arith.addf %111, %113 : vector<8x128xf32>
    %cst_23 = arith.constant 0.000000e+00 : f32
    %115 = vector.broadcast %cst_23 : f32 to vector<8x128xf32>
    %116 = arith.subf %115, %114 : vector<8x128xf32>
    %117 = math.exp %116 : vector<8x128xf32>
    %cst_24 = arith.constant 1.000000e+00 : f32
    %118 = vector.broadcast %cst_24 : f32 to vector<8x128xf32>
    %119 = arith.addf %118, %117 : vector<8x128xf32>
    %120 = tpu.reciprocal %119 {approx = true} : vector<8x128xf32> -> vector<8x128xf32>
    %121 = math.tanh %114 : vector<8x128xf32>
    %122 = vector.extract_strided_slice %120 {offsets = [0, 0], sizes = [8, 32], strides = [1, 1]} : vector<8x128xf32> to vector<8x32xf32>
    %123 = vector.extract_strided_slice %120 {offsets = [0, 32], sizes = [8, 32], strides = [1, 1]} : vector<8x128xf32> to vector<8x32xf32>
    %124 = vector.extract_strided_slice %121 {offsets = [0, 64], sizes = [8, 32], strides = [1, 1]} : vector<8x128xf32> to vector<8x32xf32>
    %125 = vector.extract_strided_slice %120 {offsets = [0, 96], sizes = [8, 32], strides = [1, 1]} : vector<8x128xf32> to vector<8x32xf32>
    %126 = arith.mulf %123, %108 : vector<8x32xf32>
    %127 = arith.mulf %122, %124 : vector<8x32xf32>
    %128 = arith.addf %126, %127 : vector<8x32xf32>
    %129 = math.tanh %128 : vector<8x32xf32>
    %130 = arith.mulf %125, %129 : vector<8x32xf32>
    %131 = vector.extract_strided_slice %8 {offsets = [8, 0], sizes = [8, 128], strides = [1, 1]} : vector<64x128xf32> to vector<8x128xf32>
    %132 = arith.truncf %130 : vector<8x32xf32> to vector<8x32xbf16>
    %cst_25 = arith.constant dense<0.000000e+00> : vector<8x128xf32>
    %133 = tpu.matmul %132, %4, %cst_25 {dimension_numbers = #tpu.dot_dimension_numbers<[1], [0], [0], [1], [0, 0, 1, 1], [], []>} : vector<8x32xbf16>, vector<32x128xbf16>, vector<8x128xf32> -> vector<8x128xf32>
    %134 = arith.addf %131, %133 : vector<8x128xf32>
    %cst_26 = arith.constant 0.000000e+00 : f32
    %135 = vector.broadcast %cst_26 : f32 to vector<8x128xf32>
    %136 = arith.subf %135, %134 : vector<8x128xf32>
    %137 = math.exp %136 : vector<8x128xf32>
    %cst_27 = arith.constant 1.000000e+00 : f32
    %138 = vector.broadcast %cst_27 : f32 to vector<8x128xf32>
    %139 = arith.addf %138, %137 : vector<8x128xf32>
    %140 = tpu.reciprocal %139 {approx = true} : vector<8x128xf32> -> vector<8x128xf32>
    %141 = math.tanh %134 : vector<8x128xf32>
    %142 = vector.extract_strided_slice %140 {offsets = [0, 0], sizes = [8, 32], strides = [1, 1]} : vector<8x128xf32> to vector<8x32xf32>
    %143 = vector.extract_strided_slice %140 {offsets = [0, 32], sizes = [8, 32], strides = [1, 1]} : vector<8x128xf32> to vector<8x32xf32>
    %144 = vector.extract_strided_slice %141 {offsets = [0, 64], sizes = [8, 32], strides = [1, 1]} : vector<8x128xf32> to vector<8x32xf32>
    %145 = vector.extract_strided_slice %140 {offsets = [0, 96], sizes = [8, 32], strides = [1, 1]} : vector<8x128xf32> to vector<8x32xf32>
    %146 = arith.mulf %143, %128 : vector<8x32xf32>
    %147 = arith.mulf %142, %144 : vector<8x32xf32>
    %148 = arith.addf %146, %147 : vector<8x32xf32>
    %149 = math.tanh %148 : vector<8x32xf32>
    %150 = arith.mulf %145, %149 : vector<8x32xf32>
    %151 = vector.extract_strided_slice %8 {offsets = [0, 0], sizes = [8, 128], strides = [1, 1]} : vector<64x128xf32> to vector<8x128xf32>
    %152 = arith.truncf %150 : vector<8x32xf32> to vector<8x32xbf16>
    %cst_28 = arith.constant dense<0.000000e+00> : vector<8x128xf32>
    %153 = tpu.matmul %152, %4, %cst_28 {dimension_numbers = #tpu.dot_dimension_numbers<[1], [0], [0], [1], [0, 0, 1, 1], [], []>} : vector<8x32xbf16>, vector<32x128xbf16>, vector<8x128xf32> -> vector<8x128xf32>
    %154 = arith.addf %151, %153 : vector<8x128xf32>
    %cst_29 = arith.constant 0.000000e+00 : f32
    %155 = vector.broadcast %cst_29 : f32 to vector<8x128xf32>
    %156 = arith.subf %155, %154 : vector<8x128xf32>
    %157 = math.exp %156 : vector<8x128xf32>
    %cst_30 = arith.constant 1.000000e+00 : f32
    %158 = vector.broadcast %cst_30 : f32 to vector<8x128xf32>
    %159 = arith.addf %158, %157 : vector<8x128xf32>
    %160 = tpu.reciprocal %159 {approx = true} : vector<8x128xf32> -> vector<8x128xf32>
    %161 = math.tanh %154 : vector<8x128xf32>
    %162 = vector.extract_strided_slice %160 {offsets = [0, 0], sizes = [8, 32], strides = [1, 1]} : vector<8x128xf32> to vector<8x32xf32>
    %163 = vector.extract_strided_slice %160 {offsets = [0, 32], sizes = [8, 32], strides = [1, 1]} : vector<8x128xf32> to vector<8x32xf32>
    %164 = vector.extract_strided_slice %161 {offsets = [0, 64], sizes = [8, 32], strides = [1, 1]} : vector<8x128xf32> to vector<8x32xf32>
    %165 = vector.extract_strided_slice %160 {offsets = [0, 96], sizes = [8, 32], strides = [1, 1]} : vector<8x128xf32> to vector<8x32xf32>
    %166 = arith.mulf %163, %148 : vector<8x32xf32>
    %167 = arith.mulf %162, %164 : vector<8x32xf32>
    %168 = arith.addf %166, %167 : vector<8x32xf32>
    %169 = math.tanh %168 : vector<8x32xf32>
    %170 = arith.mulf %165, %169 : vector<8x32xf32>
    %c48 = arith.constant 48 : index
    %c0_31 = arith.constant 0 : index
    %171 = vector.load %arg1[%c48, %c0_31] : memref<168x128xf32, #tpu.memory_space<vmem>>, vector<32x32xf32>
    %c80 = arith.constant 80 : index
    %c0_32 = arith.constant 0 : index
    %172 = vector.load %arg1[%c80, %c0_32] : memref<168x128xf32, #tpu.memory_space<vmem>>, vector<1x32xf32>
    %c88 = arith.constant 88 : index
    %c0_33 = arith.constant 0 : index
    %173 = vector.load %arg1[%c88, %c0_33] : memref<168x128xf32, #tpu.memory_space<vmem>>, vector<32x32xf32>
    %c120 = arith.constant 120 : index
    %c0_34 = arith.constant 0 : index
    %174 = vector.load %arg1[%c120, %c0_34] : memref<168x128xf32, #tpu.memory_space<vmem>>, vector<1x32xf32>
    %c128 = arith.constant 128 : index
    %c0_35 = arith.constant 0 : index
    %175 = vector.load %arg1[%c128, %c0_35] : memref<168x128xf32, #tpu.memory_space<vmem>>, vector<32x16xf32>
    %c160 = arith.constant 160 : index
    %c0_36 = arith.constant 0 : index
    %176 = vector.load %arg1[%c160, %c0_36] : memref<168x128xf32, #tpu.memory_space<vmem>>, vector<1x16xf32>
    %cst_37 = arith.constant dense<0.000000e+00> : vector<8x32xf32>
    %177 = tpu.matmul %170, %171, %cst_37 {dimension_numbers = #tpu.dot_dimension_numbers<[1], [0], [0], [1], [0, 0, 1, 1], [], []>} : vector<8x32xf32>, vector<32x32xf32>, vector<8x32xf32> -> vector<8x32xf32>
    %178 = vector.broadcast %172 : vector<1x32xf32> to vector<8x32xf32>
    %179 = arith.addf %177, %178 : vector<8x32xf32>
    %180 = math.tanh %179 : vector<8x32xf32>
    %cst_38 = arith.constant dense<0.000000e+00> : vector<8x32xf32>
    %181 = tpu.matmul %180, %173, %cst_38 {dimension_numbers = #tpu.dot_dimension_numbers<[1], [0], [0], [1], [0, 0, 1, 1], [], []>} : vector<8x32xf32>, vector<32x32xf32>, vector<8x32xf32> -> vector<8x32xf32>
    %182 = vector.broadcast %174 : vector<1x32xf32> to vector<8x32xf32>
    %183 = arith.addf %181, %182 : vector<8x32xf32>
    %184 = math.tanh %183 : vector<8x32xf32>
    %cst_39 = arith.constant dense<0.000000e+00> : vector<8x16xf32>
    %185 = tpu.matmul %184, %175, %cst_39 {dimension_numbers = #tpu.dot_dimension_numbers<[1], [0], [0], [1], [0, 0, 1, 1], [], []>} : vector<8x32xf32>, vector<32x16xf32>, vector<8x16xf32> -> vector<8x16xf32>
    %186 = vector.broadcast %176 : vector<1x16xf32> to vector<8x16xf32>
    %187 = arith.addf %185, %186 : vector<8x16xf32>
    %c0_40 = arith.constant 0 : index
    %c0_41 = arith.constant 0 : index
    %188 = vector.load %arg2[%c0_40, %c0_41] : memref<8x16xf32, #tpu.memory_space<vmem>>, vector<8x16xf32>
    tpu.vector_store %arg2[%c0_40, %c0_41], %187 {strides = array<i32>} : memref<8x16xf32, #tpu.memory_space<vmem>>, vector<8x16xf32>,
    return
  }
}

</mosaic_0001>

<bundles_post_ra>
// kernel: tpu_custom_call.1
= control target key start
LH: loop header
LB: loop body
LE: loop exit
PB: predicated region body
PF: predicated region fallthrough
CT: control target
= control target key end

     0   :  { %7 = vsyncpa [#allocation3], 0  ;;  %s1491_s0 = inlined_call_operand.vmem [shape: bf16[64,5], index: 0, kind: input, shape index: {}]   ;;  %s1492_s1 = inlined_call_operand.hbm [shape: f32[168,128], index: 1, kind: input, shape index: {}]   ;;  %s1493_s2 = inlined_call_operand.hbm [shape: f32[8,16], index: 2, kind: output, shape index: {}]  }
   0x1   :  { %8 = vsyncpa [#allocation4], 0  ;;  %s1307_s9 = smov [#allocation2]   ;;  %s1259_s13 = scalar_lea.hbm %s1492_s1, 2688 }
   0x2   :  { %s16_s10 = sshll.u32 %s1307_s9, 4  ;;  %p1260_p0 = scmp.ne.s32.totalorder %s1492_s1, %s1259_s13  ;;  %s17_s10 = int_to_ptr.vmem [resolvable:$true] %s16_s10 }
   0x3   :  { %p1263_p1 = scmp.lt.u32.totalorder %s1259_s13, %s1492_s1 }
   0x5   :  { %p1265_p2 = pnand %p1263_p1, %p1260_p0 }
   0x7   :  { %1268 = shalt.err (!%p1265_p2)
}
   0x8   :  { %s1269_s18 = scalar_lea.vmem %s17_s10, 2688  ;;  %p1274_p4 = scmp.lt.s32.totalorder %s17_s10, %s17_s10 }
   0x9   :  { %p1270_p3 = scmp.ne.s32.totalorder %s17_s10, %s1269_s18  ;;  %p1275_p5 = scmp.lt.s32.totalorder %s1269_s18, %s1269_s18 }
   0xb   :  { %p1276_p6 = por %p1275_p5, %p1274_p4 }
   0xd   :  { %p1277_p7 = pnand %p1276_p6, %p1270_p3 }
   0xf   :  { %1280 = shalt.err (!%p1277_p7)
}
  0x10   :  { %s1308_s19 = smov 128   ;;  %s1309_s20 = smov 8  }
  0x11   :  { %22 = dma.hbm_to_vmem [thread:$0]  %s1492_s1, 2688, %s17_s10, [#allocation3], %s1308_s19, %s1308_s19, %s1309_s20  }
  0x12   :  { %1303 = dma.done.wait [#allocation3], 2688  }
  0x13   :  { %1304 = vsyncadd [#allocation3], 4294964608  ;;  %vm81_vm0 = vcmask 1041408   ;;  %v1310_v0 = vmov 0.0   ;;  %vm1311_vm1 = vmmov 0   ;;  %vm82_vm2 = vcmask 1042432  }
  0x14   :  { %1061 = vmatprep.subr.bf16.mxu1 %v1310_v0  ;;  %1065 = vmatprep.mubr.msk.bf16.mxu1 %vm1311_vm1, %v1310_v0  ;;  %v1312_v1 = vmov 65535   ;;  %vm68_vm3 = vcmask 39936   ;;  %v27_v4 = vld [vmem:[#allocation2] sm:$0x1f]  ;;  %v30_v7 = vld [vmem:[#allocation2 + $0x10] sm:$0xff]  ;;  %v31_v8 = vld [vmem:[#allocation2 + $0x18] sm:$0xff] }
  0x15   :  { %v83_v2 = vsel %vm81_vm0, 4294967295, %v1312_v1  ;;  %v28_v5 = vpack.c.bf16 %v27_v4, %v27_v4  ;;  %v1187_v6 = vld [vmem:[%s1491_s0] sm:$0xff]   ;;  %v1352_v10 = vpack.c.bf16 %v31_v8, %v30_v7  ;;  %v33_v12 = vld [vmem:[#allocation2 + $0x28] sm:$0xff]  ;;  %v1189_v15 = vld [vmem:[%s1491_s0 + $0x10] sm:$0xff]   ;;  %v1313_v16 = vmov 0   ;;  %s1315_s30 = smov 32  }
  0x16   :  { %v84_v3 = vsel %vm82_vm2, %v83_v2, 0  ;;  %1053 = vmatprep.mubr.msk.bf16.mxu0 %vm68_vm3, %v1187_v6  ;;  %v32_v11 = vld [vmem:[#allocation2 + $0x20] sm:$0xff]  ;;  %v1188_v13 = vld [vmem:[%s1491_s0 + $0x8] sm:$0xff]   ;;  %v1190_v17 = vld [vmem:[%s1491_s0 + $0x18] sm:$0xff]   ;;  %s1314_s0 = smov 64   ;;  %vm153_vm4 = vcmask 261120  }
  0x17   :  { %v86_v9 = vand.u32 %v84_v3, %v28_v5  ;;  %1062 = vmatpush3.bf16.msra.mxu1 %v1352_v10  ;;  %v1358_v14 = vpack.c.bf16 %v33_v12, %v32_v11  ;;  %v985_v18 = vld [vmem:[#allocation2 + $0x8] ss:$0 sm:$0xff]  ;;  %s1317_s3 = smov [#allocation5]   ;;  %vm968_vm5 = vcmask 130048  }
  0x18   :  { %1063 = vmatprep.subr.bf16.mxu1 %v1310_v0  ;;  %s976_s4 = sshll.u32 %s1317_s3, 4  ;;  %s977_s4 = int_to_ptr.vmem [resolvable:$true] %s976_s4 }
  0x19   :  { %1051 = vmatprep.subr.bf16.mxu0 %v86_v9  ;;  %s1281_s5 = scalar_lea.vmem %s977_s4, 128  ;;  %p1286_p9 = scmp.lt.s32.totalorder %s977_s4, %s977_s4 }
  0x1a   :  { %1052 = vmatpush3.bf16.msra.mxu0 %v86_v9  ;;  %p1282_p8 = scmp.ne.s32.totalorder %s977_s4, %s1281_s5  ;;  %p1287_p10 = scmp.lt.s32.totalorder %s1281_s5, %s1281_s5 }
  0x1b   :  { %1077 = vmatprep.subr.bf16.mxu0 %v1310_v0  ;;  %1064 = vmatpush3.bf16.msra.mxu1 %v1358_v14 }
  0x1c   :  { %1069 = vmatprep.subr.bf16.mxu1 %v1310_v0  ;;  %p1288_p11 = por %p1287_p10, %p1286_p9 }
  0x1d   :  { %1054 = vmatmul.mubr.msk.bf16.vlgmr.msra.gmra.mrb[0].mxu0 %vm68_vm3, %v1188_v13 }
  0x1e   :  { %1057 = vmatprep.mubr.msk.bf16.mxu0 %vm68_vm3, %v1189_v15  ;;  %1078 = vmatpush3.bf16.msra.mxu0 %v1352_v10  ;;  %p1289_p12 = pnand %p1288_p11, %p1282_p8 }
  0x1f   :  { %1066 = vmatmul.mubr.bf16.vlgmr.msra.gmra.mrb[0].mxu1 %v1313_v16  ;;  %1079 = vmatprep.subr.bf16.mxu0 %v1310_v0 }
  0x20   :  { %1070 = vmatpush3.bf16.msra.mxu1 %v1352_v10  ;;  %1073 = vmatprep.mubr.msk.bf16.mxu1 %vm1311_vm1, %v1310_v0 }
  0x21   :  { %1071 = vmatprep.subr.bf16.mxu1 %v1310_v0 }
  0x22   :  { %1080 = vmatpush3.bf16.msra.mxu0 %v1358_v14 }
  0x23   :  { %1093 = vmatprep.subr.bf16.mxu0 %v1310_v0 }
  0x24   :  { %1072 = vmatpush3.bf16.msra.mxu1 %v1358_v14 }
  0x25   :  { %1058 = vmatmul.mubr.msk.bf16.gmra.mrb[4].mxu0 %vm68_vm3, %v1190_v17  ;;  %1085 = vmatprep.subr.bf16.mxu1 %v1310_v0 }
  0x26   :  { %1081 = vmatprep.mubr.msk.bf16.mxu0 %vm1311_vm1, %v1310_v0 }
  0xf0   :  { %v1055_v19 = vpop.f32.mrb[0].mxu0 }
  0xf1   :  { %v1385_v20 = vadd.f32 %v1055_v19, %v985_v18  ;;  %v122_v21 = vpop.f32.mrb[1].mxu0 }
  0xf2   :  { %v1387_v22 = vadd.f32 %v985_v18, %v122_v21  ;;  %v1056_v23 = vpop.f32.mrb[2].mxu0  ;;  %v191_v26 = vpop.f32.mrb[0].mxu1 }
  0xf3   :  { %v1389_v24 = vadd.f32 %v1056_v23, %v985_v18  ;;  %v125_v25 = vpop.f32.mrb[3].mxu0  ;;  %v1067_v28 = vpop.f32.mrb[1].mxu1 }
  0xf4   :  { %v1391_v27 = vadd.f32 %v985_v18, %v125_v25  ;;  %v194_v29 = vpop.f32.mrb[2].mxu1 }
  0xf5   :  { %v1068_v30 = vpop.f32.mrb[3].mxu1 }
  0xf8   :  { %v1059_v31 = vpop.f32.mrb[4].mxu0 }
  0xf9   :  { %v147_v32 = vadd.f32 %v1059_v31, %v985_v18  ;;  %v138_v33 = vpop.f32.mrb[5].mxu0 }
  0xfa   :  { %v1393_v34 = vadd.f32 %v985_v18, %v138_v33  ;;  %v1060_v35 = vpop.f32.mrb[6].mxu0 }
  0xfb   :  { %v150_v36 = vadd.f32 %v1060_v35, %v985_v18  ;;  %v141_v37 = vpop.f32.mrb[7].mxu0 }
  0xfc   :  { %v1395_v38 = vadd.f32 %v985_v18, %v141_v37 }
  0xfd   :  { %v197_v39 = vadd.f32 %v191_v26, %v150_v36 }
  0xff   :  { %1191 = vtanh.f32 %v197_v39  ;;  %v198_v41 = vsub.f32 0.0, %v197_v39 }
 0x101   :  { %v199_v42 = vmul.f32 1.442695, %v198_v41 }
 0x103   :  { %1193 = vpow2.f32 %v199_v42 }
 0x109   :  { %v1192_v40 = vpop.eup %1191 }
 0x10a   :  { %206 = vrot.lane.b32.xlu0 %v1192_v40, %s1314_s0 }
 0x10d   :  { %v1194_v43 = vpop.eup %1193 }
 0x10e   :  { %v201_v44 = vadd.f32 1.0, %v1194_v43 }
 0x110   :  { %1195 = vrcp.f32 %v201_v44 }
 0x11a   :  { %v1196_v45 = vpop.eup %1195 }
 0x11b   :  { %v204_v48 = vmul.f32 0.0, %v1196_v45 }
 0x17c   :  { %v207_v46 = vpop.permute.xlu0 %206 }
 0x17d   :  { %v209_v47 = vmul.f32 %v1196_v45, %v207_v46 }
 0x17f   :  { %211 = vrot.lane.b32.xlu0 %v209_v47, %s1315_s30 }
 0x1f1   :  { %v212_v49 = vpop.permute.xlu0 %211 }
 0x1f2   :  { %v214_v50 = vadd.f32 %v212_v49, %v204_v48 }
 0x1f4   :  { %1197 = vtanh.f32 %v214_v50 }
 0x1fe   :  { %v1198_v51 = vpop.eup %1197 }
 0x1ff   :  { %217 = vrot.lane.b32.xlu1 %v1198_v51, %s1314_s0 }
 0x271   :  { %v218_v52 = vpop.permute.xlu1 %217 }
 0x272   :  { %v220_v53 = vmul.f32 %v1196_v45, %v218_v52 }
 0x274   :  { %v221_v54 = vpack.c.bf16 %v220_v53, %v220_v53 }
 0x276   :  { %223 = vrot.lane.b32.xlu1 %v221_v54, %s1315_s30 }
 0x2e8   :  { %v224_v55 = vpop.permute.xlu1 %223 }
 0x2e9   :  { %1074 = vmatmul.mubr.msk.bf16.vlgmr.msra.gmra.mrb[4].mxu1 %vm153_vm4, %v224_v55 }
 0x2ea   :  { %1086 = vmatpush3.bf16.msra.mxu1 %v1352_v10  ;;  %1089 = vmatprep.mubr.msk.bf16.mxu1 %vm1311_vm1, %v1310_v0 }
 0x2eb   :  { %1087 = vmatprep.subr.bf16.mxu1 %v1310_v0 }
 0x2ee   :  { %1088 = vmatpush3.bf16.msra.mxu1 %v1358_v14 }
 0x2ef   :  { %1101 = vmatprep.subr.bf16.mxu1 %v1310_v0 }
 0x3bc   :  { %v262_v56 = vpop.f32.mrb[4].mxu1 }
 0x3bd   :  { %v268_v57 = vadd.f32 %v262_v56, %v147_v32  ;;  %v1075_v58 = vpop.f32.mrb[5].mxu1 }
 0x3be   :  { %v265_v59 = vpop.f32.mrb[6].mxu1 }
 0x3bf   :  { %1199 = vtanh.f32 %v268_v57  ;;  %v1076_v60 = vpop.f32.mrb[7].mxu1  ;;  %v269_v62 = vsub.f32 0.0, %v268_v57 }
 0x3c1   :  { %v270_v63 = vmul.f32 1.442695, %v269_v62 }
 0x3c3   :  { %1201 = vpow2.f32 %v270_v63 }
 0x3c9   :  { %v1200_v61 = vpop.eup %1199 }
 0x3ca   :  { %277 = vrot.lane.b32.xlu0 %v1200_v61, %s1314_s0 }
 0x3cd   :  { %v1202_v1 = vpop.eup %1201 }
 0x3ce   :  { %v272_v2 = vadd.f32 1.0, %v1202_v1 }
 0x3d0   :  { %1203 = vrcp.f32 %v272_v2 }
 0x3da   :  { %v1204_v3 = vpop.eup %1203 }
 0x3db   :  { %v275_v6 = vmul.f32 %v1204_v3, %v214_v50 }
 0x43c   :  { %v278_v4 = vpop.permute.xlu0 %277 }
 0x43d   :  { %v280_v5 = vmul.f32 %v1204_v3, %v278_v4 }
 0x43f   :  { %282 = vrot.lane.b32.xlu1 %v280_v5, %s1315_s30 }
 0x4b1   :  { %v283_v7 = vpop.permute.xlu1 %282 }
 0x4b2   :  { %v285_v8 = vadd.f32 %v283_v7, %v275_v6 }
 0x4b4   :  { %1205 = vtanh.f32 %v285_v8 }
 0x4be   :  { %v1206_v9 = vpop.eup %1205 }
 0x4bf   :  { %288 = vrot.lane.b32.xlu0 %v1206_v9, %s1314_s0 }
 0x531   :  { %v289_v11 = vpop.permute.xlu0 %288 }
 0x532   :  { %v291_v12 = vmul.f32 %v1204_v3, %v289_v11 }
 0x534   :  { %v292_v13 = vpack.c.bf16 %v291_v12, %v291_v12 }
 0x536   :  { %294 = vrot.lane.b32.xlu1 %v292_v13, %s1315_s30 }
 0x5a8   :  { %v295_v15 = vpop.permute.xlu1 %294 }
 0x5a9   :  { %1082 = vmatmul.mubr.msk.bf16.vlgmr.msra.gmra.mrb[8].mxu0 %vm153_vm4, %v295_v15 }
 0x5aa   :  { %1094 = vmatpush3.bf16.msra.mxu0 %v1352_v10  ;;  %1097 = vmatprep.mubr.msk.bf16.mxu0 %vm1311_vm1, %v1310_v0 }
 0x5ab   :  { %1095 = vmatprep.subr.bf16.mxu0 %v1310_v0 }
 0x5ae   :  { %1096 = vmatpush3.bf16.msra.mxu0 %v1358_v14 }
 0x5af   :  { %1109 = vmatprep.subr.bf16.mxu0 %v1310_v0 }
 0x67c   :  { %v333_v16 = vpop.f32.mrb[8].mxu0 }
 0x67d   :  { %v339_v17 = vadd.f32 %v333_v16, %v1395_v38  ;;  %v1083_v18 = vpop.f32.mrb[9].mxu0 }
 0x67e   :  { %v336_v19 = vpop.f32.mrb[10].mxu0 }
 0x67f   :  { %1207 = vtanh.f32 %v339_v17  ;;  %v1084_v21 = vpop.f32.mrb[11].mxu0  ;;  %v340_v25 = vsub.f32 0.0, %v339_v17 }
 0x681   :  { %v341_v26 = vmul.f32 1.442695, %v340_v25 }
 0x683   :  { %1209 = vpow2.f32 %v341_v26 }
 0x689   :  { %v1208_v23 = vpop.eup %1207 }
 0x68a   :  { %348 = vrot.lane.b32.xlu0 %v1208_v23, %s1314_s0 }
 0x68d   :  { %v1210_v28 = vpop.eup %1209 }
 0x68e   :  { %v343_v29 = vadd.f32 1.0, %v1210_v28 }
 0x690   :  { %1211 = vrcp.f32 %v343_v29 }
 0x69a   :  { %v1212_v30 = vpop.eup %1211 }
 0x69b   :  { %v346_v33 = vmul.f32 %v1212_v30, %v285_v8 }
 0x6fc   :  { %v349_v31 = vpop.permute.xlu0 %348 }
 0x6fd   :  { %v351_v32 = vmul.f32 %v1212_v30, %v349_v31 }
 0x6ff   :  { %353 = vrot.lane.b32.xlu1 %v351_v32, %s1315_s30 }
 0x771   :  { %v354_v35 = vpop.permute.xlu1 %353 }
 0x772   :  { %v356_v36 = vadd.f32 %v354_v35, %v346_v33 }
 0x774   :  { %1213 = vtanh.f32 %v356_v36 }
 0x77e   :  { %v1214_v37 = vpop.eup %1213 }
 0x77f   :  { %359 = vrot.lane.b32.xlu0 %v1214_v37, %s1314_s0 }
 0x7f1   :  { %v360_v38 = vpop.permute.xlu0 %359 }
 0x7f2   :  { %v362_v39 = vmul.f32 %v1212_v30, %v360_v38 }
 0x7f4   :  { %v363_v40 = vpack.c.bf16 %v362_v39, %v362_v39 }
 0x7f6   :  { %365 = vrot.lane.b32.xlu1 %v363_v40, %s1315_s30 }
 0x868   :  { %v366_v41 = vpop.permute.xlu1 %365 }
 0x869   :  { %1090 = vmatmul.mubr.msk.bf16.vlgmr.msra.gmra.mrb[8].mxu1 %vm153_vm4, %v366_v41 }
 0x86a   :  { %1102 = vmatpush3.bf16.msra.mxu1 %v1352_v10  ;;  %1105 = vmatprep.mubr.msk.bf16.mxu1 %vm1311_vm1, %v1310_v0 }
 0x86b   :  { %1103 = vmatprep.subr.bf16.mxu1 %v1310_v0 }
 0x86e   :  { %1104 = vmatpush3.bf16.msra.mxu1 %v1358_v14 }
 0x86f   :  { %1117 = vmatprep.subr.bf16.mxu1 %v1310_v0 }
 0x93c   :  { %v404_v42 = vpop.f32.mrb[8].mxu1 }
 0x93d   :  { %v410_v43 = vadd.f32 %v404_v42, %v1393_v34  ;;  %v1091_v44 = vpop.f32.mrb[9].mxu1 }
 0x93e   :  { %v407_v45 = vpop.f32.mrb[10].mxu1 }
 0x93f   :  { %1215 = vtanh.f32 %v410_v43  ;;  %v1092_v46 = vpop.f32.mrb[11].mxu1  ;;  %v411_v48 = vsub.f32 0.0, %v410_v43 }
 0x941   :  { %v412_v49 = vmul.f32 1.442695, %v411_v48 }
 0x943   :  { %1217 = vpow2.f32 %v412_v49 }
 0x949   :  { %v1216_v47 = vpop.eup %1215 }
 0x94a   :  { %419 = vrot.lane.b32.xlu0 %v1216_v47, %s1314_s0 }
 0x94d   :  { %v1218_v50 = vpop.eup %1217 }
 0x94e   :  { %v414_v51 = vadd.f32 1.0, %v1218_v50 }
 0x950   :  { %1219 = vrcp.f32 %v414_v51 }
 0x95a   :  { %v1220_v52 = vpop.eup %1219 }
 0x95b   :  { %v417_v55 = vmul.f32 %v1220_v52, %v356_v36 }
 0x9bc   :  { %v420_v53 = vpop.permute.xlu0 %419 }
 0x9bd   :  { %v422_v54 = vmul.f32 %v1220_v52, %v420_v53 }
 0x9bf   :  { %424 = vrot.lane.b32.xlu1 %v422_v54, %s1315_s30 }
 0xa31   :  { %v425_v34 = vpop.permute.xlu1 %424 }
 0xa32   :  { %v427_v56 = vadd.f32 %v425_v34, %v417_v55 }
 0xa34   :  { %1221 = vtanh.f32 %v427_v56 }
 0xa3e   :  { %v1222_v57 = vpop.eup %1221 }
 0xa3f   :  { %430 = vrot.lane.b32.xlu0 %v1222_v57, %s1314_s0 }
 0xab1   :  { %v431_v58 = vpop.permute.xlu0 %430 }
 0xab2   :  { %v433_v59 = vmul.f32 %v1220_v52, %v431_v58 }
 0xab4   :  { %v434_v60 = vpack.c.bf16 %v433_v59, %v433_v59 }
 0xab6   :  { %436 = vrot.lane.b32.xlu1 %v434_v60, %s1315_s30 }
 0xb28   :  { %v437_v61 = vpop.permute.xlu1 %436 }
 0xb29   :  { %1098 = vmatmul.mubr.msk.bf16.vlgmr.msra.gmra.mrb[12].mxu0 %vm153_vm4, %v437_v61 }
 0xb2a   :  { %1110 = vmatpush3.bf16.msra.mxu0 %v1352_v10  ;;  %1113 = vmatprep.mubr.msk.bf16.mxu0 %vm1311_vm1, %v1310_v0 }
 0xb2b   :  { %1111 = vmatprep.subr.bf16.mxu0 %v1310_v0 }
 0xb2e   :  { %1112 = vmatpush3.bf16.msra.mxu0 %v1358_v14 }
 0xbfc   :  { %v475_v62 = vpop.f32.mrb[12].mxu0 }
 0xbfd   :  { %v481_v63 = vadd.f32 %v475_v62, %v1389_v24  ;;  %v1099_v1 = vpop.f32.mrb[13].mxu0 }
 0xbfe   :  { %v478_v2 = vpop.f32.mrb[14].mxu0 }
 0xbff   :  { %1223 = vtanh.f32 %v481_v63  ;;  %v1100_v3 = vpop.f32.mrb[15].mxu0  ;;  %v482_v5 = vsub.f32 0.0, %v481_v63 }
 0xc01   :  { %v483_v6 = vmul.f32 1.442695, %v482_v5 }
 0xc03   :  { %1225 = vpow2.f32 %v483_v6 }
 0xc09   :  { %v1224_v4 = vpop.eup %1223 }
 0xc0a   :  { %490 = vrot.lane.b32.xlu0 %v1224_v4, %s1314_s0 }
 0xc0d   :  { %v1226_v7 = vpop.eup %1225 }
 0xc0e   :  { %v485_v8 = vadd.f32 1.0, %v1226_v7 }
 0xc10   :  { %1227 = vrcp.f32 %v485_v8 }
 0xc1a   :  { %v1228_v9 = vpop.eup %1227 }
 0xc1b   :  { %v488_v13 = vmul.f32 %v1228_v9, %v427_v56 }
 0xc7c   :  { %v491_v11 = vpop.permute.xlu0 %490 }
 0xc7d   :  { %v493_v12 = vmul.f32 %v1228_v9, %v491_v11 }
 0xc7f   :  { %495 = vrot.lane.b32.xlu1 %v493_v12, %s1315_s30 }
 0xcf1   :  { %v496_v24 = vpop.permute.xlu1 %495 }
 0xcf2   :  { %v498_v15 = vadd.f32 %v496_v24, %v488_v13 }
 0xcf4   :  { %1229 = vtanh.f32 %v498_v15 }
 0xcfe   :  { %v1230_v16 = vpop.eup %1229 }
 0xcff   :  { %501 = vrot.lane.b32.xlu0 %v1230_v16, %s1314_s0  ;;  %v718_v16 = vld [vmem:[#allocation2 + $0x30] sm:$0xff] }
 0xd71   :  { %v502_v17 = vpop.permute.xlu0 %501 }
 0xd72   :  { %v504_v18 = vmul.f32 %v1228_v9, %v502_v17  ;;  %v719_v17 = vld [vmem:[#allocation2 + $0x38] sm:$0xff] }
 0xd74   :  { %v505_v19 = vpack.c.bf16 %v504_v18, %v504_v18  ;;  %v720_v18 = vld [vmem:[#allocation2 + $0x40] sm:$0xff] }
 0xd76   :  { %507 = vrot.lane.b32.xlu1 %v505_v19, %s1315_s30  ;;  %v1316_v19 = vmov 0.0|0.0  }
 0xd77   :  { %1158 = vmatprep.subr.bf16.mxu0 %v1316_v19 }
 0xde8   :  { %v508_v21 = vpop.permute.xlu1 %507 }
 0xde9   :  { %1106 = vmatmul.mubr.msk.bf16.vlgmr.msra.gmra.mrb[12].mxu1 %vm153_vm4, %v508_v21  ;;  %v1159_v21 = vpack.c.bf16 %v719_v17, %v718_v16 }
 0xdea   :  { %1118 = vmatpush3.bf16.msra.mxu1 %v1352_v10  ;;  %1121 = vmatprep.mubr.msk.bf16.mxu1 %vm1311_vm1, %v1310_v0 }
 0xdeb   :  { %1119 = vmatprep.subr.bf16.mxu1 %v1310_v0 }
 0xdee   :  { %1120 = vmatpush3.bf16.msra.mxu1 %v1358_v14 }
 0xdef   :  { %1164 = vmatprep.subr.bf16.mxu1 %v1316_v19 }
 0xebc   :  { %v546_v23 = vpop.f32.mrb[12].mxu1 }
 0xebd   :  { %v552_v25 = vadd.f32 %v546_v23, %v1385_v20  ;;  %v1107_v26 = vpop.f32.mrb[13].mxu1  ;;  %v721_v23 = vld [vmem:[#allocation2 + $0x48] sm:$0xff] }
 0xebe   :  { %v549_v28 = vpop.f32.mrb[14].mxu1 }
 0xebf   :  { %1231 = vtanh.f32 %v552_v25  ;;  %v1108_v29 = vpop.f32.mrb[15].mxu1  ;;  %v553_v31 = vsub.f32 0.0, %v552_v25  ;;  %v1162_v25 = vpack.c.bf16 %v721_v23, %v720_v18 }
 0xec1   :  { %v554_v32 = vmul.f32 1.442695, %v553_v31  ;;  %v723_v31 = vld [vmem:[#allocation2 + $0x58] sm:$0xff] }
 0xec3   :  { %1233 = vpow2.f32 %v554_v32  ;;  %v724_v32 = vld [vmem:[#allocation2 + $0x60] sm:$0xff] }
 0xec9   :  { %v1232_v30 = vpop.eup %1231 }
 0xeca   :  { %561 = vrot.lane.b32.xlu0 %v1232_v30, %s1314_s0 }
 0xecd   :  { %v1234_v10 = vpop.eup %1233 }
 0xece   :  { %v556_v33 = vadd.f32 1.0, %v1234_v10  ;;  %v725_v10 = vld [vmem:[#allocation2 + $0x68] sm:$0xff] }
 0xed0   :  { %1235 = vrcp.f32 %v556_v33  ;;  %v1165_v33 = vpack.c.bf16 %v724_v32, %v723_v31 }
 0xeda   :  { %v1236_v35 = vpop.eup %1235 }
 0xedb   :  { %v559_v14 = vmul.f32 %v1236_v35, %v498_v15 }
 0xf3c   :  { %v562_v36 = vpop.permute.xlu0 %561 }
 0xf3d   :  { %v564_v37 = vmul.f32 %v1236_v35, %v562_v36 }
 0xf3f   :  { %566 = vrot.lane.b32.xlu1 %v564_v37, %s1315_s30  ;;  %v1001_v37 = vld [vmem:[#allocation2 + $0x50] ss:$0 sm:$0xff] }
 0xfb1   :  { %v567_v20 = vpop.permute.xlu1 %566 }
 0xfb2   :  { %v569_v38 = vadd.f32 %v567_v20, %v559_v14 }
 0xfb4   :  { %1237 = vtanh.f32 %v569_v38 }
 0xfbe   :  { %v1238_v39 = vpop.eup %1237 }
 0xfbf   :  { %572 = vrot.lane.b32.xlu0 %v1238_v39, %s1314_s0 }
0x1031   :  { %v573_v40 = vpop.permute.xlu0 %572 }
0x1032   :  { %v575_v41 = vmul.f32 %v1236_v35, %v573_v40  ;;  %v726_v35 = vld [vmem:[#allocation2 + $0x70] sm:$0xff]  ;;  %v728_v40 = vld [vmem:[#allocation2 + $0x80] sm:$0xff] }
0x1033   :  { %v1168_v36 = vpack.c.bf16 %v726_v35, %v725_v10 }
0x1034   :  { %v576_v42 = vpack.c.bf16 %v575_v41, %v575_v41  ;;  %v729_v41 = vld [vmem:[#allocation2 + $0x88] sm:$0xff] }
0x1036   :  { %578 = vrot.lane.b32.xlu1 %v576_v42, %s1315_s30  ;;  %v1171_v42 = vpack.c.bf16 %v729_v41, %v728_v40 }
0x10a8   :  { %v579_v43 = vpop.permute.xlu1 %578 }
0x10a9   :  { %1114 = vmatmul.mubr.msk.bf16.vlgmr.msra.gmra.mrb[16].mxu0 %vm153_vm4, %v579_v43  ;;  %v731_v43 = vld [vmem:[#allocation2 + $0x98] sm:$0xff] }
0x10aa   :  { %1133 = vmatprep.mubr.msk.f32.mxu0 %vm1311_vm1, %v1310_v0  ;;  %1160 = vmatpush3.bf16.msra.mxu0 %v1159_v21 }
0x10ab   :  { %1161 = vmatprep.subr.bf16.mxu0 %v1316_v19 }
0x10ae   :  { %1163 = vmatpush3.bf16.msra.mxu0 %v1162_v25 }
0x10af   :  { %1170 = vmatprep.subr.bf16.mxu0 %v1316_v19 }
0x117c   :  { %v617_v44 = vpop.f32.mrb[16].mxu0 }
0x117d   :  { %v623_v45 = vadd.f32 %v617_v44, %v1391_v27  ;;  %v1115_v46 = vpop.f32.mrb[17].mxu0 }
0x117e   :  { %v620_v47 = vpop.f32.mrb[18].mxu0 }
0x117f   :  { %1239 = vtanh.f32 %v623_v45  ;;  %v1116_v48 = vpop.f32.mrb[19].mxu0  ;;  %v624_v50 = vsub.f32 0.0, %v623_v45  ;;  %v1003_v45 = vld [vmem:[#allocation2 + $0x78] ss:$0 sm:$0xff] }
0x1181   :  { %v625_v51 = vmul.f32 1.442695, %v624_v50  ;;  %v1005_v50 = vld [vmem:[#allocation2 + $0xa0] ss:$0 sm:$0xff] }
0x1183   :  { %1241 = vpow2.f32 %v625_v51 }
0x1189   :  { %v1240_v49 = vpop.eup %1239 }
0x118a   :  { %632 = vrot.lane.b32.xlu0 %v1240_v49, %s1314_s0 }
0x118d   :  { %v1242_v52 = vpop.eup %1241 }
0x118e   :  { %v627_v53 = vadd.f32 1.0, %v1242_v52 }
0x1190   :  { %1243 = vrcp.f32 %v627_v53 }
0x119a   :  { %v1244_v54 = vpop.eup %1243 }
0x119b   :  { %v630_v56 = vmul.f32 %v1244_v54, %v569_v38 }
0x11fc   :  { %v633_v55 = vpop.permute.xlu0 %632 }
0x11fd   :  { %v635_v34 = vmul.f32 %v1244_v54, %v633_v55 }
0x11ff   :  { %637 = vrot.lane.b32.xlu1 %v635_v34, %s1315_s30 }
0x1271   :  { %v638_v27 = vpop.permute.xlu1 %637 }
0x1272   :  { %v640_v57 = vadd.f32 %v638_v27, %v630_v56 }
0x1274   :  { %1245 = vtanh.f32 %v640_v57 }
0x127e   :  { %v1246_v58 = vpop.eup %1245 }
0x127f   :  { %643 = vrot.lane.b32.xlu0 %v1246_v58, %s1314_s0 }
0x12f1   :  { %v644_v59 = vpop.permute.xlu0 %643 }
0x12f2   :  { %v646_v60 = vmul.f32 %v1244_v54, %v644_v59 }
0x12f4   :  { %v647_v61 = vpack.c.bf16 %v646_v60, %v646_v60 }
0x12f6   :  { %649 = vrot.lane.b32.xlu1 %v647_v61, %s1315_s30 }
0x1368   :  { %v650_v62 = vpop.permute.xlu1 %649 }
0x1369   :  { %1122 = vmatmul.mubr.msk.bf16.vlgmr.msra.gmra.mrb[16].mxu1 %vm153_vm4, %v650_v62 }
0x136a   :  { %1144 = vmatprep.mubr.msk.f32.mxu1 %vm1311_vm1, %v1310_v0  ;;  %1166 = vmatpush3.bf16.msra.mxu1 %v1165_v33 }
0x136b   :  { %1167 = vmatprep.subr.bf16.mxu1 %v1316_v19 }
0x136e   :  { %1169 = vmatpush3.bf16.msra.mxu1 %v1168_v36 }
0x143c   :  { %v688_v63 = vpop.f32.mrb[16].mxu1 }
0x143d   :  { %v694_v1 = vadd.f32 %v688_v63, %v1387_v22  ;;  %v1123_v2 = vpop.f32.mrb[17].mxu1 }
0x143e   :  { %v691_v3 = vpop.f32.mrb[18].mxu1 }
0x143f   :  { %1247 = vtanh.f32 %v694_v1  ;;  %v1124_v4 = vpop.f32.mrb[19].mxu1  ;;  %v695_v6 = vsub.f32 0.0, %v694_v1 }
0x1441   :  { %v696_v7 = vmul.f32 1.442695, %v695_v6 }
0x1443   :  { %1249 = vpow2.f32 %v696_v7 }
0x1449   :  { %v1248_v5 = vpop.eup %1247 }
0x144a   :  { %703 = vrot.lane.b32.xlu0 %v1248_v5, %s1314_s0 }
0x144d   :  { %v1250_v8 = vpop.eup %1249 }
0x144e   :  { %v698_v9 = vadd.f32 1.0, %v1250_v8 }
0x1450   :  { %1251 = vrcp.f32 %v698_v9 }
0x145a   :  { %v1252_v11 = vpop.eup %1251 }
0x145b   :  { %v701_v24 = vmul.f32 %v1252_v11, %v640_v57 }
0x14bc   :  { %v704_v12 = vpop.permute.xlu0 %703 }
0x14bd   :  { %v706_v13 = vmul.f32 %v1252_v11, %v704_v12 }
0x14bf   :  { %708 = vrot.lane.b32.xlu1 %v706_v13, %s1315_s30 }
0x1531   :  { %v709_v22 = vpop.permute.xlu1 %708 }
0x1532   :  { %v711_v15 = vadd.f32 %v709_v22, %v701_v24 }
0x1534   :  { %1253 = vtanh.f32 %v711_v15 }
0x153e   :  { %v1254_v26 = vpop.eup %1253 }
0x153f   :  { %714 = vrot.lane.b32.xlu0 %v1254_v26, %s1314_s0 }
0x15b1   :  { %v715_v28 = vpop.permute.xlu0 %714 }
0x15b2   :  { %v717_v29 = vmul.f32 %v1252_v11, %v715_v28 }
0x15b4   :  { %738 = vrot.lane.b32.xlu1 %v717_v29, %s1315_s30 }
0x1626   :  { %v739_v30 = vpop.permute.xlu1 %738 }
0x1627   :  { %1134 = vmatmul.mubr.msk.f32.vlgmr.msra.gmra.mrb[20].mxu0 %vm153_vm4, %v739_v30 }
0x1628   :  { %1155 = vmatprep.mubr.msk.f32.mxu0 %vm1311_vm1, %v1310_v0  ;;  %v730_v0 = vld [vmem:[#allocation2 + $0x90] sm:$0xff]  ;;  %1172 = vmatpush3.bf16.msra.mxu0 %v1171_v42 }
0x1629   :  { %v1174_v44 = vpack.c.bf16 %v731_v43, %v730_v0  ;;  %1173 = vmatprep.subr.bf16.mxu0 %v1316_v19 }
0x162c   :  { %1175 = vmatpush3.bf16.msra.mxu0 %v1174_v44 }
0x16fa   :  { %v808_v14 = vpop.f32.mrb[20].mxu0 }
0x16fb   :  { %v809_v20 = vadd.f32 %v1001_v37, %v808_v14  ;;  %v1135_v38 = vpop.f32.mrb[21].mxu0 }
0x16fd   :  { %1255 = vtanh.f32 %v809_v20 }
0x1707   :  { %v1256_v39 = vpop.eup %1255 }
0x1708   :  { %1145 = vmatmul.mubr.msk.f32.vlgmr.msra.gmra.mrb[20].mxu1 %vm153_vm4, %v1256_v39 }
0x17db   :  { %v886_v46 = vpop.f32.mrb[20].mxu1 }
0x17dc   :  { %v887_v47 = vadd.f32 %v1003_v45, %v886_v46  ;;  %v1146_v48 = vpop.f32.mrb[21].mxu1 }
0x17de   :  { %1257 = vtanh.f32 %v887_v47 }
0x17e8   :  { %v1258_v49 = vpop.eup %1257 }
0x17e9   :  { %1156 = vmatmul.mubr.msk.f32.vlgmr.msra.gmra.mrb[22].mxu0 %vm153_vm4, %v1258_v49 }
0x18bc   :  { %v964_v51 = vpop.f32.mrb[22].mxu0 }
0x18bd   :  { %v965_v52 = vadd.f32 %v1005_v50, %v964_v51  ;;  %v1157_v53 = vpop.f32.mrb[23].mxu0 }
0x18bf   :  { %969 = vst.msk [vmem:[#allocation5] sm:$0xff] %vm968_vm5, %v965_v52 }
0x18c0   :  { %1292 = shalt.err (!%p1289_p12)
}
0x18c1   :  { %s1293_s8 = scalar_lea.hbm %s1493_s2, 128 }
0x18c2   :  { %p1294_p13 = scmp.ne.s32.totalorder %s1493_s2, %s1293_s8  ;;  %p1297_p0 = scmp.lt.u32.totalorder %s1293_s8, %s1493_s2 }
0x18c4   :  { %p1299_p1 = pnand %p1297_p0, %p1294_p13 }
0x18c6   :  { %1302 = shalt.err (!%p1299_p1)
}
0x18c7   :  { %979 = dma.vmem_to_hbm [thread:$0]  %s977_s4, 128, %s1493_s2, [#allocation4]  }
0x18c8   :  { %1305 = dma.done.wait [#allocation4], 128  }
0x18c9   :  { %1306 = vsyncadd [#allocation4], 4294967168 }
0x18ca   :  { %983 = vsyncpa [#allocation3], 1 }
0x18cb   :  { %984 = vsyncpa [#allocation4], 1 }

</bundles_post_ra>
